<compile_context>
chip_gen: v5e
topology: v5e:2x2
jax: 0.10.0
libtpu: 0.0.40
codegen_flags: <defaults>
</compile_context>

<pallas_src>
import functools

import jax
import jax.numpy as jnp
from jax.experimental import pallas as pl
from jax.experimental.pallas import tpu as pltpu

HIDDEN = 600                       # fixed by the module definition (fc1 -> 600)
HIDDEN_PAD = 640                   # 5 * 128, zero-padded (bit-exact)

# VMEM sizing (conservative across generations):
#   v5e: 128 MiB physical / 16 MiB default scoped
#   v6e: 128 MiB physical / 32 MiB default scoped
#   v7x:  64 MiB physical / 32 MiB default scoped
_VMEM_LIMIT_BYTES = 48 * 1024 * 1024   # raise scoped limit, stay under v7x physical
_VMEM_TILE_BUDGET = 40 * 1024 * 1024   # headroom for compiler-internal scratch


def _round_up(n, m):
    return ((n + m - 1) // m) * m


def _generator_kernel(x_ref, w1_ref, b1_ref, w4_ref, b4_ref, eps_ref,
                      z_ref, mean_ref):
    # fc1 + ReLU (MXU matmul, f32 accumulation). Zero-padded hidden columns give
    # relu(0 + 0) = 0, so they contribute nothing to fc4 -> bit-exact.
    x = x_ref[...].astype(w1_ref.dtype)
    rep = jnp.dot(x, w1_ref[...], preferred_element_type=jnp.float32)
    rep = jnp.maximum(rep + b1_ref[...], 0.0)

    # fc4, logmean half only (the logvar half is discarded by the module).
    h = jnp.dot(rep.astype(w4_ref.dtype), w4_ref[...],
                preferred_element_type=jnp.float32)
    h = h + b4_ref[...]

    mean = jnp.exp(h)                      # EUP
    z = eps_ref[...] + mean                # var == 1  =>  eps * var + mean == eps + mean

    z_ref[...] = z.astype(z_ref.dtype)
    mean_ref[...] = mean.astype(mean_ref.dtype)


def prepare_params(w1, b1, w4, b4, out_dim, dtype=jnp.float32):
    """One-time weight prep: slice the logmean half of fc4 and zero-pad to
    lane-friendly shapes. w1: [D_in, 600], b1: [600], w4: [600, 2*out], b4: [2*out].
    `dtype` may be jnp.bfloat16 on v6e/v7x if f32 parity is not required; biases
    are kept f32 (added after f32 accumulation)."""
    out_pad = _round_up(out_dim, 128)
    d_in = w1.shape[0]

    w1p = jnp.zeros((d_in, HIDDEN_PAD), dtype).at[:, :HIDDEN].set(w1.astype(dtype))
    b1p = jnp.zeros((1, HIDDEN_PAD), jnp.float32).at[0, :HIDDEN].set(b1)

    # Only the logmean columns of fc4 are ever used.
    w4m = jnp.zeros((HIDDEN_PAD, out_pad), dtype)
    w4m = w4m.at[:HIDDEN, :out_dim].set(w4[:, :out_dim].astype(dtype))
    b4m = jnp.zeros((1, out_pad), jnp.float32).at[0, :out_dim].set(b4[:out_dim])
    return w1p, b1p, w4m, b4m


def _pick_batch_tile(B, d_in, out_pad, tb, weight_bytes):
    """VMEM-aware batch tile. Returns (tb_eff, num_tiles)."""
    # Per-batch-row VMEM cost (bytes):
    #   x   double-buffered f32 : 2 * d_in   * 4
    #   eps double-buffered f32 : 2 * out_pad * 4
    #   z + mean, double-buffered: 4 * out_pad * 4
    #   rep temporary (f32)     : HIDDEN_PAD * 4
    #   h / mean temporaries    : 2 * out_pad * 4
    per_row = (2 * d_in * 4 + 2 * out_pad * 4 + 4 * out_pad * 4
               + HIDDEN_PAD * 4 + 2 * out_pad * 4)
    avail = max(_VMEM_TILE_BUDGET - weight_bytes, 8 * per_row)
    tb_cap = max(8, (min(tb, avail // per_row) // 8) * 8)

    # At least 2 batch tiles whenever B allows it so ("parallel",) can shard the
    # batch across both v7x TensorCores. Tiles are multiples of 8 sublanes; the
    # last tile may be partial (masked by the pipeline -> no batch zero-padding).
    n_tiles = max(pl.cdiv(B, tb_cap), 2 if B > 8 else 1)
    tb_eff = min(tb_cap, _round_up(pl.cdiv(B, n_tiles), 8))
    if tb_eff >= B:                      # single tile covering the whole batch
        tb_eff = B
    return tb_eff, pl.cdiv(B, tb_eff)


@functools.partial(jax.jit, static_argnames=("out_dim", "tb"))
def generator_forward(x, w1p, b1p, w4m, b4m, eps, *, out_dim, tb=512):
    """x: [B, D_in]; prepared params from prepare_params();
    eps: [B, out_pad] N(0,1) noise (columns >= out_dim are ignored — sample it
    directly at width out_pad so no pad copy is needed; [B, out_dim] also accepted).
    Returns (z, mean, var), each [B, out_dim] (var is constant ones)."""
    B, d_in = x.shape
    out_pad = w4m.shape[1]

    if eps.shape[-1] != out_pad:                       # fallback path only
        eps = jnp.pad(eps, ((0, 0), (0, out_pad - eps.shape[-1])))

    weight_bytes = sum(int(a.size) * a.dtype.itemsize for a in (w1p, b1p, w4m, b4m))
    tb_eff, num_tiles = _pick_batch_tile(B, d_in, out_pad, tb, weight_bytes)

    out_sds = jax.ShapeDtypeStruct((B, out_pad), jnp.float32)
    z_p, mean_p = pl.pallas_call(
        _generator_kernel,
        out_shape=(out_sds, out_sds),
        grid_spec=pltpu.PrefetchScalarGridSpec(
            num_scalar_prefetch=0,
            grid=(num_tiles,),
            in_specs=[
                pl.BlockSpec((tb_eff, d_in), lambda i: (i, 0)),       # x tile
                pl.BlockSpec((d_in, HIDDEN_PAD), lambda i: (0, 0),    # w1 (resident,
                             pipeline_mode=pl.Buffered(1)),           #  single buffer)
                pl.BlockSpec((1, HIDDEN_PAD), lambda i: (0, 0),       # b1
                             pipeline_mode=pl.Buffered(1)),
                pl.BlockSpec((HIDDEN_PAD, out_pad), lambda i: (0, 0), # w4 mean-half
                             pipeline_mode=pl.Buffered(1)),
                pl.BlockSpec((1, out_pad), lambda i: (0, 0),          # b4 mean-half
                             pipeline_mode=pl.Buffered(1)),
                pl.BlockSpec((tb_eff, out_pad), lambda i: (i, 0)),    # eps tile
            ],
            out_specs=[
                pl.BlockSpec((tb_eff, out_pad), lambda i: (i, 0)),    # z
                pl.BlockSpec((tb_eff, out_pad), lambda i: (i, 0)),    # mean
            ],
        ),
        compiler_params=pltpu.CompilerParams(
            dimension_semantics=("parallel",),        # shard batch tiles across TCs
            vmem_limit_bytes=_VMEM_LIMIT_BYTES,
        ),
    )(x, w1p, b1p, w4m, b4m, eps)

    # Lane-dense kernel outputs (out_pad = round_up(out_dim, 128)); trim only the
    # padded lanes. No batch-dimension padding or slicing anywhere.
    z = z_p[:, :out_dim]
    mean = mean_p[:, :out_dim]
    var = jnp.ones((B, out_dim), jnp.float32)         # torch.ones(...) * 1.0
    return z, mean, var


def init_params(key, in_dim, out_dim):
    """Deterministic PyTorch-style uniform(-1/sqrt(fan_in), 1/sqrt(fan_in)) init.
    Weights stored pre-transposed: [fan_in, fan_out]."""
    k1, k2, k3, k4 = jax.random.split(key, 4)
    lim1 = 1.0 / jnp.sqrt(in_dim)
    lim4 = 1.0 / jnp.sqrt(HIDDEN)
    w1 = jax.random.uniform(k1, (in_dim, HIDDEN), jnp.float32, -lim1, lim1)
    b1 = jax.random.uniform(k2, (HIDDEN,), jnp.float32, -lim1, lim1)
    w4 = jax.random.uniform(k3, (HIDDEN, 2 * out_dim), jnp.float32, -lim4, lim4)
    b4 = jax.random.uniform(k4, (2 * out_dim,), jnp.float32, -lim4, lim4)
    return w1, b1, w4, b4


if __name__ == "__main__":
    # B=12 deliberately exercises the multi-tile grid (2 tiles of 8 rows) and the
    # masked partial last tile (4 valid rows) with no batch padding.
    B, IN_DIM, OUT_DIM = 12, 32, 16
    OUT_PAD = _round_up(OUT_DIM, 128)

    key = jax.random.PRNGKey(0)
    kx, kp, ke = jax.random.split(key, 3)

    x = jax.random.normal(kx, (B, IN_DIM), jnp.float32)
    w1, b1, w4, b4 = init_params(kp, IN_DIM, OUT_DIM)
    # eps ~ N(0,1): training-mode reparameterization noise, sampled directly at the
    # lane-padded width so the wrapper never has to pad/copy it.
    eps = jax.random.normal(ke, (B, OUT_PAD), jnp.float32)

    w1p, b1p, w4m, b4m = prepare_params(w1, b1, w4, b4, OUT_DIM)
    z, mean, var = generator_forward(x, w1p, b1p, w4m, b4m, eps, out_dim=OUT_DIM)
    jax.block_until_ready((z, mean, var))

    # Pure-JAX reference check (full, un-padded math).
    rep = jnp.maximum(x @ w1 + b1, 0.0)
    h = rep @ w4 + b4
    mean_ref = jnp.exp(h[:, :OUT_DIM])
    var_ref = jnp.ones_like(mean_ref)
    z_ref = eps[:, :OUT_DIM] * var_ref + mean_ref
    assert jnp.allclose(mean, mean_ref, atol=1e-5, rtol=1e-5)
    assert jnp.allclose(var, var_ref)
    assert jnp.allclose(z, z_ref, atol=1e-5, rtol=1e-5)

    print("KERNEL_OK")
</pallas_src>

<mosaic_0001>
module attributes {stable_mosaic.version = 11 : i64} {
  func.func @_generator_kernel(%arg0: i32, %arg1: memref<8x32xf32, #tpu.memory_space<vmem>>, %arg2: memref<32x640xf32, #tpu.memory_space<vmem>>, %arg3: memref<1x640xf32, #tpu.memory_space<vmem>>, %arg4: memref<640x128xf32, #tpu.memory_space<vmem>>, %arg5: memref<1x128xf32, #tpu.memory_space<vmem>>, %arg6: memref<8x128xf32, #tpu.memory_space<vmem>>, %arg7: memref<8x128xf32, #tpu.memory_space<vmem>>, %arg8: memref<8x128xf32, #tpu.memory_space<vmem>>) attributes {dimension_semantics = [#tpu.dimension_semantics<parallel>], iteration_bounds = array<i64: 2>, scalar_prefetch = 0 : i64, scratch_operands = 0 : i64, tpu.core_type = #tpu.core_type<tc>, window_params = [{transform_indices = @transform_0, window_bounds = array<i64: 8, 32>}, {pipeline_mode = #tpu.pipeline_mode<synchronous>, transform_indices = @transform_1, window_bounds = array<i64: 32, 640>}, {pipeline_mode = #tpu.pipeline_mode<synchronous>, transform_indices = @transform_2, window_bounds = array<i64: 1, 640>}, {pipeline_mode = #tpu.pipeline_mode<synchronous>, transform_indices = @transform_3, window_bounds = array<i64: 640, 128>}, {pipeline_mode = #tpu.pipeline_mode<synchronous>, transform_indices = @transform_4, window_bounds = array<i64: 1, 128>}, {transform_indices = @transform_5, window_bounds = array<i64: 8, 128>}, {transform_indices = @transform_6, window_bounds = array<i64: 8, 128>}, {transform_indices = @transform_7, window_bounds = array<i64: 8, 128>}]} {
    %c0 = arith.constant 0 : index
    %c0_0 = arith.constant 0 : index
    %0 = vector.load %arg1[%c0, %c0_0] : memref<8x32xf32, #tpu.memory_space<vmem>>, vector<8x32xf32>
    %c0_1 = arith.constant 0 : index
    %c0_2 = arith.constant 0 : index
    %1 = vector.load %arg2[%c0_1, %c0_2] : memref<32x640xf32, #tpu.memory_space<vmem>>, vector<32x640xf32>
    %cst = arith.constant dense<0.000000e+00> : vector<8x640xf32>
    %2 = tpu.matmul %0, %1, %cst {dimension_numbers = #tpu.dot_dimension_numbers<[1], [0], [0], [1], [0, 0, 1, 1], [], []>} : vector<8x32xf32>, vector<32x640xf32>, vector<8x640xf32> -> vector<8x640xf32>
    %c0_3 = arith.constant 0 : index
    %c0_4 = arith.constant 0 : index
    %3 = vector.load %arg3[%c0_3, %c0_4] : memref<1x640xf32, #tpu.memory_space<vmem>>, vector<1x640xf32>
    %4 = vector.broadcast %3 : vector<1x640xf32> to vector<8x640xf32>
    %5 = arith.addf %2, %4 : vector<8x640xf32>
    %cst_5 = arith.constant 0.000000e+00 : f32
    %6 = vector.broadcast %cst_5 : f32 to vector<8x640xf32>
    %7 = arith.maximumf %5, %6 : vector<8x640xf32>
    %c0_6 = arith.constant 0 : index
    %c0_7 = arith.constant 0 : index
    %8 = vector.load %arg4[%c0_6, %c0_7] : memref<640x128xf32, #tpu.memory_space<vmem>>, vector<640x128xf32>
    %cst_8 = arith.constant dense<0.000000e+00> : vector<8x128xf32>
    %9 = tpu.matmul %7, %8, %cst_8 {dimension_numbers = #tpu.dot_dimension_numbers<[1], [0], [0], [1], [0, 0, 1, 1], [], []>} : vector<8x640xf32>, vector<640x128xf32>, vector<8x128xf32> -> vector<8x128xf32>
    %c0_9 = arith.constant 0 : index
    %c0_10 = arith.constant 0 : index
    %10 = vector.load %arg5[%c0_9, %c0_10] : memref<1x128xf32, #tpu.memory_space<vmem>>, vector<1x128xf32>
    %11 = vector.broadcast %10 : vector<1x128xf32> to vector<8x128xf32>
    %12 = arith.addf %9, %11 : vector<8x128xf32>
    %13 = math.exp %12 : vector<8x128xf32>
    %c0_11 = arith.constant 0 : index
    %c0_12 = arith.constant 0 : index
    %14 = vector.load %arg6[%c0_11, %c0_12] : memref<8x128xf32, #tpu.memory_space<vmem>>, vector<8x128xf32>
    %15 = arith.addf %14, %13 : vector<8x128xf32>
    %c0_13 = arith.constant 0 : index
    %c0_14 = arith.constant 0 : index
    %16 = vector.load %arg7[%c0_13, %c0_14] : memref<8x128xf32, #tpu.memory_space<vmem>>, vector<8x128xf32>
    tpu.vector_store %arg7[%c0_13, %c0_14], %15 {strides = array<i32>} : memref<8x128xf32, #tpu.memory_space<vmem>>, vector<8x128xf32>,
    %c0_15 = arith.constant 0 : index
    %c0_16 = arith.constant 0 : index
    %17 = vector.load %arg8[%c0_15, %c0_16] : memref<8x128xf32, #tpu.memory_space<vmem>>, vector<8x128xf32>
    tpu.vector_store %arg8[%c0_15, %c0_16], %13 {strides = array<i32>} : memref<8x128xf32, #tpu.memory_space<vmem>>, vector<8x128xf32>,
    return
  }
  func.func @transform_0(%arg0: i32) -> (i32, i32) {
    %c0_i32 = arith.constant 0 : i32
    %c0_i32_0 = arith.constant 0 : i32
    return %arg0, %c0_i32 : i32, i32
  }
  func.func @transform_1(%arg0: i32) -> (i32, i32) {
    %c0_i32 = arith.constant 0 : i32
    %c0_i32_0 = arith.constant 0 : i32
    %c0_i32_1 = arith.constant 0 : i32
    return %c0_i32, %c0_i32_0 : i32, i32
  }
  func.func @transform_2(%arg0: i32) -> (i32, i32) {
    %c0_i32 = arith.constant 0 : i32
    %c0_i32_0 = arith.constant 0 : i32
    %c0_i32_1 = arith.constant 0 : i32
    return %c0_i32, %c0_i32_0 : i32, i32
  }
  func.func @transform_3(%arg0: i32) -> (i32, i32) {
    %c0_i32 = arith.constant 0 : i32
    %c0_i32_0 = arith.constant 0 : i32
    %c0_i32_1 = arith.constant 0 : i32
    return %c0_i32, %c0_i32_0 : i32, i32
  }
  func.func @transform_4(%arg0: i32) -> (i32, i32) {
    %c0_i32 = arith.constant 0 : i32
    %c0_i32_0 = arith.constant 0 : i32
    %c0_i32_1 = arith.constant 0 : i32
    return %c0_i32, %c0_i32_0 : i32, i32
  }
  func.func @transform_5(%arg0: i32) -> (i32, i32) {
    %c0_i32 = arith.constant 0 : i32
    %c0_i32_0 = arith.constant 0 : i32
    return %arg0, %c0_i32 : i32, i32
  }
  func.func @transform_6(%arg0: i32) -> (i32, i32) {
    %c0_i32 = arith.constant 0 : i32
    %c0_i32_0 = arith.constant 0 : i32
    return %arg0, %c0_i32 : i32, i32
  }
  func.func @transform_7(%arg0: i32) -> (i32, i32) {
    %c0_i32 = arith.constant 0 : i32
    %c0_i32_0 = arith.constant 0 : i32
    return %arg0, %c0_i32 : i32, i32
  }
}

</mosaic_0001>

<bundles_post_ra>
// kernel: generator_forward.1
= control target key start
LH: loop header
LB: loop body
LE: loop exit
PB: predicated region body
PF: predicated region fallthrough
CT: control target
= control target key end

     0   :  { %s1576_s0 = inlined_call_operand.hbm [shape: f32[12,32], index: 0, kind: input, shape index: {}]   ;;  %s1577_s1 = inlined_call_operand.hbm [shape: f32[32,640], index: 1, kind: input, shape index: {}]   ;;  %s1578_s2 = inlined_call_operand.hbm [shape: f32[1,640], index: 2, kind: input, shape index: {}]   ;;  %s1579_s3 = inlined_call_operand.hbm [shape: f32[640,128], index: 3, kind: input, shape index: {}]   ;;  %s1580_s4 = inlined_call_operand.vmem [shape: f32[1,128], index: 4, kind: input, shape index: {}]   ;;  %s1581_s5 = inlined_call_operand.hbm [shape: f32[12,128], index: 5, kind: input, shape index: {}]   ;;  %s1582_s6 = inlined_call_operand.hbm [shape: f32[12,128], index: 6, kind: output, shape index: {0}]   ;;  %s1583_s7 = inlined_call_operand.hbm [shape: f32[12,128], index: 7, kind: output, shape index: {1}]  }
   0x1   :  { %1590 = sst [smem:[#allocation25_spill]] %s1577_s1 }
   0x2   :  { %13 = vsyncpa [#allocation3], 0 }
   0x3   :  { %15 = vsyncpa [#allocation3 + $0x1], 0 }
   0x4   :  { %16 = vsyncpa [#allocation6], 0 }
   0x5   :  { %17 = vsyncpa [#allocation9], 0 }
   0x6   :  { %18 = vsyncpa [#allocation4], 0 }
   0x7   :  { %20 = vsyncpa [#allocation4 + $0x1], 0 }
   0x8   :  { %21 = vsyncpa [#allocation13], 0 }
   0x9   :  { %23 = vsyncpa [#allocation13 + $0x1], 0  ;;  %s1342_s24 = smov 0   ;;  %s1344_s25 = smov 0  }
   0xa   :  { %s1346_s26 = smov 0   ;;  %s1348_s27 = smov 0  }
   0xb LB: > { %1591 = sst [smem:[#allocation20_spill]] %s1289_s26  ;;  %s1366_s8 = sadd.s32 4294967295, %s1293_s27   ;;  %s1293_s27 = sphi %s1348_s27, %s1611_s27   ;;  %s1289_s26 = sphi %s1346_s26, %s1613_s26   ;;  %s1285_s25 = sphi %s1344_s25, %s1615_s25   ;;  %s1281_s24 = sphi %s1342_s24, %s1614_s24  }
   0xc   : > { %1592 = sst [smem:[#allocation21_spill]] %s1293_s27  ;;  %p911_p0 = scmp.ge.s32.totalorder %s1293_s27, 1 }
   0xd   : > { %s1593_s1 = sld [smem:[#allocation25_spill]]  ;;  %p1589_p1 = scmp.eq.s32.totalorder %s1366_s8, 0 }
   0xe   : > { %p222_p2 = scmp.lt.s32.totalorder %s1293_s27, 3  ;;  %s1295_s10 = smov [#allocation5]  }
   0xf   : > { %s235_s11 = sshll.u32 %s1295_s10, 4  ;;  %s1296_s13 = smov 640   ;;  %s236_s11 = int_to_ptr.vmem [resolvable:$true] %s235_s11 }
  0x10   : > { %p1371_p3 = pnand %p911_p0, %p222_p2  ;;  %s1297_s14 = smov 40  }
  0x11   : > { %s910_s15 = sadd.s32 4294967294, %s1293_s27   ;;  %s1388_s16 = sadd.s32 1, %s1293_s27  }
  0x12   : > { %p959_p4 = pneg %p1371_p3  ;;  %1596 = sst [smem:[#allocation22_spill]] %s1388_s16 }
  0x13   : > { %s233_s30 = sshll.u32 %s1593_s1, 4  ;;  %s36_s17 = sadd.s32 1, %s1289_s26  ;;  %s234_s30 = int_to_ptr.hbm [resolvable:$true] %s233_s30 }
  0x14   : > { %p1380_p6 = pnand %p959_p4, %p1589_p1  ;;  %s33_s18 = ssub.s32 %s1293_s27, %s1388_s16 }
  0x15   : > { %p43_p7 = scmp.ne.s32.totalorder %s1289_s26, %s1285_s25  ;;  %p34_p8 = scmp.eq.s32.totalorder %s33_s18, 0 }
  0x16   : > { %962 = dma.hbm_to_vmem [thread:$0]  (!%p1380_p6), %s234_s30, 2560, %s236_s11, [#allocation6], %s1296_s13, %s1296_s13, %s1297_s14  }
  0x17   : > { %p44_p9 = scmp.eq.s32.totalorder %s1293_s27, 0  ;;  %p49_p10 = scmp.ne.s32.totalorder %s1285_s25, %s1281_s24 }
  0x18   : > { %p183_p11 = scmp.eq.s32.totalorder %s1366_s8, 1  ;;  %p189_p2 = scmp.eq.s32.totalorder %s910_s15, 1 }
  0x19   : > { %s1400_s19 = scalar_select %p34_p8, %s1289_s26, %s36_s17  }
  0x1a   : > { %p1402_p12 = por %p44_p9, %p43_p7  ;;  %p1408_p13 = por %p1589_p1, %p49_p10 }
  0x1b   : > { %1597 = sst [smem:[#allocation23_spill]] %s1400_s19  ;;  %p1412_p0 = por %p183_p11, %p43_p7 }
  0x1c   : > { %p986_p4 = scmp.lt.s32.totalorder %s1293_s27, 2  ;;  %s278_s23 = sand.u32 1, %s1293_s27  }
  0x1d   : > { %p1418_p5 = por %p189_p2, %p49_p10  ;;  %s280_s29 = sand.u32 1, %s1289_s26  }
  0x1e   : > { %s917_s30 = sshll.u32 %s1293_s27, 3  ;;  %s1424_s10 = sshll.u32 %s280_s29, 3 }
  0x1f   : > { %s1601_s28 = scalar_select %p1418_p5, 1, 0 }
  0x20   : > { %s286_s14 = scalar_lea.hbm %s1576_s0, %s917_s30  ;;  %s282_s18 = scalar_lea.vmem [#allocation2], %s1424_s10 }
  0x21   : > { %1602 = sst [smem:[#allocation24_spill]] %s1601_s28  ;;  %s288_s17 = sshll.u32 %s286_s14, 4  ;;  %s289_s17 = int_to_ptr.hbm [resolvable:$true] %s288_s17 }
  0x22   : > { %s290_s1 = sshll.u32 %s282_s18, 4  ;;  %p1432_p7 = pnand %p986_p4, %p1402_p12  ;;  %s291_s1 = int_to_ptr.vmem [resolvable:$true] %s290_s1 }
  0x23   : > { %s1439_s29 = scalar_lea.hbm %s1581_s5, %s917_s30  ;;  %s248_s14 = sshll.u32 %s1578_s2, 4  ;;  %s249_s14 = int_to_ptr.hbm [resolvable:$true] %s248_s14 }
  0x24   : > { %s1444_s16 = scalar_lea.sflag [#allocation3], %s278_s23  ;;  %s1063_s18 = sshra.s32 %s289_s17, 4  ;;  %s1064_s18 = int_to_ptr.hbm [resolvable:$true] %s1063_s18 }
  0x25   : > { %s1065_s20 = scalar_lea.hbm %s1064_s18, 8  ;;  %p1067_p9 = pneg %p1432_p7 }
  0x26   : > { %p1066_p8 = scmp.ne.s32.totalorder %s1064_s18, %s1065_s20  ;;  %s1070_s30 = scalar_lea.hbm %s1576_s0, 16 }
  0x27   : > { %p1071_p12 = scmp.lt.s32.totalorder %s1064_s18, %s1576_s0  ;;  %p1072_p2 = scmp.lt.s32.totalorder %s1070_s30, %s1065_s20 }
  0x28   : > { %p1068_p10 = pnand %p1067_p9, %p1066_p8 }
  0x29   : > { %p1073_p4 = por %p1072_p2, %p1071_p12 }
  0x2a   : > { %p1069_p11 = pneg %p1068_p10 }
  0x2c   : > { %p1074_p1 = pnand %p1073_p4, %p1069_p11 }
  0x2e   : > { %1077 = shalt.err (!%p1074_p1)
}
  0x2f   : > { %972 = dma.hbm_to_vmem [thread:$0]  (!%p1432_p7), %s289_s17, 128, %s291_s1, %s1444_s16  }
  0x30   : > { %s1298_s23 = smov [#allocation7]   ;;  %s259_s27 = sshll.u32 %s1579_s3, 4  ;;  %s260_s27 = int_to_ptr.hbm [resolvable:$true] %s259_s27 }
  0x31   : > { %s250_s11 = sshll.u32 %s1298_s23, 4  ;;  %s1299_s28 = smov [#allocation8]   ;;  %s251_s11 = int_to_ptr.vmem [resolvable:$true] %s250_s11 }
  0x32   : > { %965 = dma.hbm_to_vmem [thread:$0]  (!%p1380_p6), %s249_s14, 80, %s251_s11, [#allocation6]  }
  0x33   : > { %s261_s18 = sshll.u32 %s1299_s28, 4  ;;  %s307_s20 = sshll.u32 %s1439_s29, 4  ;;  %s262_s18 = int_to_ptr.vmem [resolvable:$true] %s261_s18  ;;  %s308_s20 = int_to_ptr.hbm [resolvable:$true] %s307_s20 }
  0x34   : > { %s1300_s19 = smov 128   ;;  %s1301_s30 = smov 8  }
  0x35   : > { %968 = dma.hbm_to_vmem [thread:$0]  (!%p1380_p6), %s260_s27, 10240, %s262_s18, [#allocation9], %s1300_s19, %s1300_s19, %s1301_s30  }
  0x36   : > { %s301_s1 = scalar_lea.vmem [#allocation10], %s1424_s10  ;;  %s1153_s23 = sshra.s32 %s308_s20, 4  ;;  %s1154_s23 = int_to_ptr.hbm [resolvable:$true] %s1153_s23 }
  0x37   : > { %s309_s17 = sshll.u32 %s301_s1, 4  ;;  %s1155_s13 = scalar_lea.hbm %s1154_s23, 8  ;;  %s310_s17 = int_to_ptr.vmem [resolvable:$true] %s309_s17 }
  0x38   : > { %p1156_p1 = scmp.ne.s32.totalorder %s1154_s23, %s1155_s13  ;;  %s1160_s29 = scalar_lea.hbm %s1581_s5, 16 }
  0x39   : > { %p1161_p6 = scmp.lt.s32.totalorder %s1154_s23, %s1581_s5  ;;  %p1162_p11 = scmp.lt.s32.totalorder %s1160_s29, %s1155_s13 }
  0x3a   : > { %p1158_p8 = pnand %p1156_p1, %p1067_p9 }
  0x3b   : > { %p1163_p12 = por %p1162_p11, %p1161_p6 }
  0x3c   : > { %p1159_p10 = pneg %p1158_p8 }
  0x3e   : > { %p1164_p2 = pnand %p1163_p12, %p1159_p10 }
  0x40   : > { %1167 = shalt.err (!%p1164_p2)
}
  0x41   : > { %975 = dma.hbm_to_vmem [thread:$0]  (!%p1432_p7), %s308_s20, 128, %s310_s17, %s1444_s16  }
  0x42   : > { %318 = sbr.rel (%p1371_p3) target bundleno = 395 (0x18b), region = 44  ;;  %s320_s12 = sand.u32 (!%p1371_p3), 1, %s1366_s8  }
  0x43   : > { %s1485_s10 = sand.u32 (!%p1371_p3), 1, %s1285_s25   ;;  %s321_s18 = scalar_lea.sflag (!%p1371_p3), [#allocation3], %s320_s12 }
  0x44   : > { %s1488_s27 = sshll.u32 (!%p1371_p3), %s1485_s10, 3 }
  0x45   : > { %s324_s19 = scalar_lea.vmem (!%p1371_p3), [#allocation2], %s1488_s27 }
  0x47   : > { %1256 = dma.done.wait (%p1408_p13), %s321_s18, 128  }
  0x48   : > { %1258 = vsyncadd (%p1408_p13), %s321_s18, 4294967168  ;;  %p1604_p7 = scmp.eq.s32.totalorder %s1366_s8, 0 }
  0x4a   : > { %1260 = dma.done.wait (%p1604_p7), [#allocation6], 2640   ;;  %p1605_p3 = pmov %p1604_p7 }
  0x4c   : > { %1262 = vsyncadd (%p1605_p3), [#allocation6], 4294964656  ;;  %p1606_p9 = pmov %p1605_p3 }
  0x4d   : > { %p1607_p4 = pmov %p1605_p3 }
  0x4e   : > { %1264 = dma.done.wait (%p1606_p9), [#allocation9], 10240  }
  0x4f   : > { %1266 = vsyncadd (%p1607_p4), [#allocation9], 4294957056  ;;  %s349_s9 = scalar_lea.vmem [#allocation10], %s1488_s27 }
  0x50   : > { %1268 = dma.done.wait (%p1408_p13), %s321_s18, 128  }
  0x51   : > { %1270 = vsyncadd (%p1408_p13), %s321_s18, 4294967168  ;;  %v408_v0 = vld [vmem:[#allocation5 + $0x80] sm:$0xff]  ;;  %v403_v1 = vld [vmem:[#allocation5 + $0x58] sm:$0xff]  ;;  %vm424_vm0 = vcmask 261120   ;;  %s935_s15 = sshll.u32 %s1366_s8, 3  ;;  %s390_s14 = scalar_lea.vmem [#allocation12], %s1488_s27 }
  0x52   : > { %460 = vmatpush.msra.mxu2 %v408_v0  ;;  %v398_v2 = vld [vmem:[#allocation5 + $0x30] sm:$0xff]  ;;  %v407_v3 = vld [vmem:[#allocation5 + $0x78] sm:$0xff]  ;;  %v393_v5 = vld [vmem:[#allocation5 + $0x8] sm:$0xff]  ;;  %s753_s1 = scalar_lea.hbm %s1583_s7, %s935_s15  ;;  %s739_s13 = scalar_lea.hbm %s1582_s6, %s935_s15 }
  0x53   : > { %440 = vmatpush.msra.mxu0 %v407_v3  ;;  %v402_v4 = vld [vmem:[#allocation5 + $0x50] sm:$0xff]  ;;  %v397_v6 = vld [vmem:[#allocation5 + $0x28] sm:$0xff]  ;;  %v392_v11 = vld [vmem:[#allocation5] sm:$0xff]  ;;  %s755_s11 = sshll.u32 %s390_s14, 4  ;;  %s757_s29 = sshll.u32 %s753_s1, 4  ;;  %s756_s11 = int_to_ptr.vmem [resolvable:$true] %s755_s11  ;;  %s758_s29 = int_to_ptr.hbm [resolvable:$true] %s757_s29 }
  0x54   : > { %461 = vmatpush.msra.mxu2 %v403_v1  ;;  %v410_v7 = vld [vmem:[#allocation5 + $0x90] sm:$0xff]  ;;  %v405_v9 = vld [vmem:[#allocation5 + $0x68] sm:$0xff]  ;;  %v400_v12 = vld [vmem:[#allocation5 + $0x40] sm:$0xff]  ;;  %s383_s26 = scalar_lea.vmem [#allocation11], %s1488_s27  ;;  %s743_s8 = sshll.u32 %s739_s13, 4  ;;  %s1530_s8 = int_to_ptr.hbm [resolvable:$true] %s743_s8 }
  0x55   : > { %v391_v8 = vld [vmem:[%s324_s19] sm:$0xff]  ;;  %441 = vmatpush.msra.mxu0 %v402_v4  ;;  %v409_v10 = vld [vmem:[#allocation5 + $0x88] sm:$0xff]  ;;  %500 = vmatpush.msra.mxu3 %v410_v7  ;;  %v404_v13 = vld [vmem:[#allocation5 + $0x60] sm:$0xff]  ;;  %s1525_s28 = sshll.u32 %s383_s26, 4  ;;  %s729_s12 = scalar_lea.sflag [#allocation13], %s1485_s10  ;;  %s742_s28 = int_to_ptr.vmem [resolvable:$true] %s1525_s28 }
  0x56   : > { %462 = vmatpush.msra.mxu2 %v398_v2  ;;  %v411_v14 = vld [vmem:[#allocation5 + $0x98] sm:$0xff]  ;;  %v406_v18 = vld [vmem:[#allocation5 + $0x70] sm:$0xff]  ;;  %v401_v22 = vld [vmem:[#allocation5 + $0x48] sm:$0xff]  ;;  %s1197_s18 = sshra.s32 %s758_s29, 4  ;;  %s1198_s18 = int_to_ptr.hbm [resolvable:$true] %s1197_s18 }
  0x57   : > { %442 = vmatpush.msra.mxu0 %v397_v6  ;;  %501 = vmatpush.msra.mxu3 %v405_v9  ;;  %v395_v15 = vld [vmem:[#allocation5 + $0x18] sm:$0xff]  ;;  %v394_v20 = vld [vmem:[#allocation5 + $0x10] sm:$0xff]  ;;  %v396_v25 = vld [vmem:[#allocation5 + $0x20] sm:$0xff]  ;;  %s1199_s19 = scalar_lea.hbm %s1198_s18, 8  ;;  %p1204_p10 = scmp.lt.s32.totalorder %s1198_s18, %s1583_s7 }
  0x58   : > { %463 = vmatpush.msra.mxu2 %v393_v5  ;;  %v548_v16 = vld [vmem:[#allocation8 + $0x78] sm:$0xff]  ;;  %v547_v19 = vld [vmem:[#allocation8 + $0x70] sm:$0xff]  ;;  %v546_v23 = vld [vmem:[#allocation8 + $0x68] sm:$0xff]  ;;  %p1200_p13 = scmp.ne.s32.totalorder %s1198_s18, %s1199_s19 }
  0x59   : > { %929 = vmatmul.msk.f32.vlgmr.msra.gmra.mxu2 %vm424_vm0, %v391_v8  ;;  %443 = vmatpush.msra.mxu0 %v392_v11  ;;  %v399_v17 = vld [vmem:[#allocation5 + $0x38] sm:$0xff]  ;;  %v545_v27 = vld [vmem:[#allocation8 + $0x60] sm:$0xff]  ;;  %v578_v29 = vld [vmem:[#allocation8 + $0x168] sm:$0xff] }
  0x5a   : > { %480 = vmatpush.msrb.mxu2 %v409_v10  ;;  %928 = vmatmul.msk.f32.vlgmr.msra.gmra.mxu0 %vm424_vm0, %v391_v8  ;;  %v580_v21 = vld [vmem:[#allocation8 + $0x178] sm:$0xff]  ;;  %v579_v26 = vld [vmem:[#allocation8 + $0x170] sm:$0xff]  ;;  %v562_v32 = vld [vmem:[#allocation8 + $0xe8] sm:$0xff]  ;;  %p1201_p1 = pnand %p1200_p13, %p1412_p0 }
  0x5b   : > { %502 = vmatpush.msra.mxu3 %v400_v12  ;;  %520 = vmatpush.msrb.mxu0 %v411_v14  ;;  %v564_v24 = vld [vmem:[#allocation8 + $0xf8] sm:$0xff]  ;;  %v563_v28 = vld [vmem:[#allocation8 + $0xf0] sm:$0xff]  ;;  %v577_v33 = vld [vmem:[#allocation8 + $0x160] sm:$0xff] }
  0x5c   : > { %481 = vmatpush.msrb.mxu2 %v404_v13  ;;  %617 = vmatpush.msra.mxu1 %v548_v16  ;;  %v544_v30 = vld [vmem:[#allocation8 + $0x58] sm:$0xff]  ;;  %v543_v34 = vld [vmem:[#allocation8 + $0x50] sm:$0xff]  ;;  %v561_v36 = vld [vmem:[#allocation8 + $0xe0] sm:$0xff]  ;;  %p1202_p8 = pneg %p1201_p1 }
  0x5d   : > { %503 = vmatpush.msra.mxu3 %v395_v15  ;;  %521 = vmatpush.msrb.mxu0 %v406_v18  ;;  %v596_v31 = vld [vmem:[#allocation8 + $0x1f8] sm:$0xff]  ;;  %v595_v35 = vld [vmem:[#allocation8 + $0x1f0] sm:$0xff]  ;;  %v542_v38 = vld [vmem:[#allocation8 + $0x48] sm:$0xff] }
  0x5e   : > { %482 = vmatpush.msrb.mxu2 %v399_v17  ;;  %931 = vmatmul.msk.f32.vlgmr.msra.gmra.mxu3 %vm424_vm0, %v391_v8  ;;  %v576_v37 = vld [vmem:[#allocation8 + $0x158] sm:$0xff]  ;;  %v594_v39 = vld [vmem:[#allocation8 + $0x1e8] sm:$0xff]  ;;  %v575_v41 = vld [vmem:[#allocation8 + $0x150] sm:$0xff] }
  0x5f   : > { %618 = vmatpush.msra.mxu1 %v547_v19  ;;  %657 = vmatpush.msrb.mxu3 %v580_v21  ;;  %v560_v40 = vld [vmem:[#allocation8 + $0xd8] sm:$0xff]  ;;  %v541_v42 = vld [vmem:[#allocation8 + $0x40] sm:$0xff]  ;;  %v559_v44 = vld [vmem:[#allocation8 + $0xd0] sm:$0xff] }
  0x60   : > { %483 = vmatpush.msrb.mxu2 %v394_v20  ;;  %522 = vmatpush.msrb.mxu0 %v401_v22  ;;  %v593_v43 = vld [vmem:[#allocation8 + $0x1e0] sm:$0xff]  ;;  %v574_v45 = vld [vmem:[#allocation8 + $0x148] sm:$0xff]  ;;  %v540_v46 = vld [vmem:[#allocation8 + $0x38] sm:$0xff] }
  0x61   : > { %930 = vmatmul.msk.f32.vlgmr.msrb.gmra.mxu2 %vm424_vm0, %v391_v8  ;;  %619 = vmatpush.msra.mxu1 %v546_v23  ;;  %v592_v47 = vld [vmem:[#allocation8 + $0x1d8] sm:$0xff]  ;;  %v558_v48 = vld [vmem:[#allocation8 + $0xc8] sm:$0xff]  ;;  %v573_v49 = vld [vmem:[#allocation8 + $0x140] sm:$0xff] }
  0x62   : > { %637 = vmatpush.msra.mxu2 %v564_v24  ;;  %523 = vmatpush.msrb.mxu0 %v396_v25  ;;  %v539_v50 = vld [vmem:[#allocation8 + $0x30] sm:$0xff]  ;;  %v557_v51 = vld [vmem:[#allocation8 + $0xc0] sm:$0xff]  ;;  %v572_v52 = vld [vmem:[#allocation8 + $0x138] sm:$0xff] }
  0x63   : > { %658 = vmatpush.msrb.mxu3 %v579_v26  ;;  %932 = vmatmul.msk.f32.vlgmr.msrb.gmra.mxu0 %vm424_vm0, %v391_v8  ;;  %v538_v53 = vld [vmem:[#allocation8 + $0x28] sm:$0xff]  ;;  %v556_v54 = vld [vmem:[#allocation8 + $0xb8] sm:$0xff]  ;;  %v537_v55 = vld [vmem:[#allocation8 + $0x20] sm:$0xff] }
  0x64   : > { %620 = vmatpush.msra.mxu1 %v545_v27  ;;  %638 = vmatpush.msra.mxu2 %v563_v28  ;;  %v555_v56 = vld [vmem:[#allocation8 + $0xb0] sm:$0xff]  ;;  %v536_v57 = vld [vmem:[#allocation8 + $0x18] sm:$0xff]  ;;  %v554_v58 = vld [vmem:[#allocation8 + $0xa8] sm:$0xff] }
  0x65   : > { %659 = vmatpush.msrb.mxu3 %v578_v29  ;;  %677 = vmatpush.msra.mxu0 %v596_v31  ;;  %v535_v59 = vld [vmem:[#allocation8 + $0x10] sm:$0xff]  ;;  %v553_v60 = vld [vmem:[#allocation8 + $0xa0] sm:$0xff]  ;;  %v534_v61 = vld [vmem:[#allocation8 + $0x8] sm:$0xff] }
  0x66   : > { %621 = vmatpush.msra.mxu1 %v544_v30  ;;  %639 = vmatpush.msra.mxu2 %v562_v32  ;;  %v552_v62 = vld [vmem:[#allocation8 + $0x98] sm:$0xff]  ;;  %v533_v63 = vld [vmem:[#allocation8] sm:$0xff]  ;;  %v611_v1 = vld [vmem:[#allocation8 + $0x270] sm:$0xff] }
  0x67   : > { %660 = vmatpush.msrb.mxu3 %v577_v33  ;;  %678 = vmatpush.msra.mxu0 %v595_v35  ;;  %v612_v0 = vld [vmem:[#allocation8 + $0x278] sm:$0xff]  ;;  %v610_v2 = vld [vmem:[#allocation8 + $0x268] sm:$0xff]  ;;  %v609_v3 = vld [vmem:[#allocation8 + $0x260] sm:$0xff] }
  0x68   : > { %622 = vmatpush.msra.mxu1 %v543_v34  ;;  %640 = vmatpush.msra.mxu2 %v561_v36  ;;  %v551_v4 = vld [vmem:[#allocation8 + $0x90] sm:$0xff]  ;;  %v608_v7 = vld [vmem:[#allocation8 + $0x258] sm:$0xff]  ;;  %v550_v8 = vld [vmem:[#allocation8 + $0x88] sm:$0xff] }
  0x69   : > { %661 = vmatpush.msrb.mxu3 %v576_v37  ;;  %679 = vmatpush.msra.mxu0 %v594_v39  ;;  %v571_v5 = vld [vmem:[#allocation8 + $0x130] sm:$0xff]  ;;  %v570_v9 = vld [vmem:[#allocation8 + $0x128] sm:$0xff]  ;;  %v549_v12 = vld [vmem:[#allocation8 + $0x80] sm:$0xff] }
  0x6a   : > { %623 = vmatpush.msra.mxu1 %v542_v38  ;;  %641 = vmatpush.msra.mxu2 %v560_v40  ;;  %v591_v6 = vld [vmem:[#allocation8 + $0x1d0] sm:$0xff]  ;;  %v590_v10 = vld [vmem:[#allocation8 + $0x1c8] sm:$0xff]  ;;  %v569_v13 = vld [vmem:[#allocation8 + $0x120] sm:$0xff] }
  0x6b   : > { %662 = vmatpush.msrb.mxu3 %v575_v41  ;;  %680 = vmatpush.msra.mxu0 %v593_v43  ;;  %v607_v11 = vld [vmem:[#allocation8 + $0x250] sm:$0xff]  ;;  %v589_v14 = vld [vmem:[#allocation8 + $0x1c0] sm:$0xff]  ;;  %v606_v15 = vld [vmem:[#allocation8 + $0x248] sm:$0xff] }
  0x6c   : > { %624 = vmatpush.msra.mxu1 %v541_v42  ;;  %642 = vmatpush.msra.mxu2 %v559_v44  ;;  %v568_v16 = vld [vmem:[#allocation8 + $0x118] sm:$0xff]  ;;  %v605_v18 = vld [vmem:[#allocation8 + $0x240] sm:$0xff]  ;;  %v567_v19 = vld [vmem:[#allocation8 + $0x110] sm:$0xff] }
  0x6d   : > { %663 = vmatpush.msrb.mxu3 %v574_v45  ;;  %681 = vmatpush.msra.mxu0 %v592_v47  ;;  %v588_v17 = vld [vmem:[#allocation8 + $0x1b8] sm:$0xff]  ;;  %v587_v20 = vld [vmem:[#allocation8 + $0x1b0] sm:$0xff]  ;;  %v566_v22 = vld [vmem:[#allocation8 + $0x108] sm:$0xff] }
  0x6e   : > { %625 = vmatpush.msra.mxu1 %v540_v46  ;;  %643 = vmatpush.msra.mxu2 %v558_v48  ;;  %v604_v21 = vld [vmem:[#allocation8 + $0x238] sm:$0xff]  ;;  %v586_v23 = vld [vmem:[#allocation8 + $0x1a8] sm:$0xff]  ;;  %v603_v24 = vld [vmem:[#allocation8 + $0x230] sm:$0xff] }
  0x6f   : > { %664 = vmatpush.msrb.mxu3 %v573_v49  ;;  %682 = vmatpush.msra.mxu0 %v591_v6  ;;  %v565_v25 = vld [vmem:[#allocation8 + $0x100] sm:$0xff]  ;;  %v602_v27 = vld [vmem:[#allocation8 + $0x228] sm:$0xff]  ;;  %v584_v28 = vld [vmem:[#allocation8 + $0x198] sm:$0xff] }
  0x70   : > { %626 = vmatpush.msra.mxu1 %v539_v50  ;;  %644 = vmatpush.msra.mxu2 %v557_v51  ;;  %v585_v26 = vld [vmem:[#allocation8 + $0x1a0] sm:$0xff]  ;;  %v583_v30 = vld [vmem:[#allocation8 + $0x190] sm:$0xff]  ;;  %v600_v31 = vld [vmem:[#allocation8 + $0x218] sm:$0xff] }
  0x71   : > { %665 = vmatpush.msrb.mxu3 %v572_v52  ;;  %683 = vmatpush.msra.mxu0 %v590_v10  ;;  %v601_v29 = vld [vmem:[#allocation8 + $0x220] sm:$0xff]  ;;  %v582_v32 = vld [vmem:[#allocation8 + $0x188] sm:$0xff]  ;;  %v599_v33 = vld [vmem:[#allocation8 + $0x210] sm:$0xff] }
  0x72   : > { %627 = vmatpush.msra.mxu1 %v538_v53  ;;  %645 = vmatpush.msra.mxu2 %v556_v54  ;;  %v581_v34 = vld [vmem:[#allocation8 + $0x180] sm:$0xff]  ;;  %v598_v35 = vld [vmem:[#allocation8 + $0x208] sm:$0xff]  ;;  %v412_v37 = vld [vmem:[#allocation7] sm:$0x1f] }
  0x73   : > { %666 = vmatpush.msrb.mxu3 %v571_v5  ;;  %684 = vmatpush.msra.mxu0 %v589_v14  ;;  %v597_v36 = vld [vmem:[#allocation8 + $0x200] sm:$0xff]  ;;  %v414_v38 = vperm.slane %v412_v37, 0  ;;  %v415_v40 = vperm.slane %v412_v37, 1  ;;  %v417_v45 = vperm.slane %v412_v37, 3  ;;  %v418_v46 = vperm.slane %v412_v37, 4 }
  0x74   : > { %628 = vmatpush.msra.mxu1 %v537_v55  ;;  %646 = vmatpush.msra.mxu2 %v555_v56  ;;  %v416_v48 = vperm.slane %v412_v37, 2  ;;  %v719_v6 = vld [vmem:[%s349_s9] sm:$0xff]  ;;  %s1203_s9 = scalar_lea.hbm %s1583_s7, 16 }
  0x75   : > { %667 = vmatpush.msrb.mxu3 %v570_v9  ;;  %685 = vmatpush.msra.mxu0 %v588_v17  ;;  %p1205_p6 = scmp.lt.s32.totalorder %s1203_s9, %s1199_s19 }
  0x76   : > { %629 = vmatpush.msra.mxu1 %v536_v57  ;;  %647 = vmatpush.msra.mxu2 %v554_v58  ;;  %v1030_v58 = vld [vmem:[%s1580_s4] ss:$0 sm:$0xff] }
  0x77   : > { %668 = vmatpush.msrb.mxu3 %v569_v13  ;;  %686 = vmatpush.msra.mxu0 %v587_v20  ;;  %p1206_p11 = por %p1205_p6, %p1204_p10 }
  0x78   : > { %630 = vmatpush.msra.mxu1 %v535_v59  ;;  %648 = vmatpush.msra.mxu2 %v553_v60 }
  0x79   : > { %669 = vmatpush.msrb.mxu3 %v568_v16  ;;  %687 = vmatpush.msra.mxu0 %v586_v23  ;;  %p1207_p12 = pnand %p1206_p11, %p1202_p8 }
  0x7a   : > { %631 = vmatpush.msra.mxu1 %v534_v61  ;;  %649 = vmatpush.msra.mxu2 %v552_v62 }
  0x7b   : > { %670 = vmatpush.msrb.mxu3 %v567_v19  ;;  %688 = vmatpush.msra.mxu0 %v585_v26 }
  0x7c   : > { %632 = vmatpush.msra.mxu1 %v533_v63  ;;  %650 = vmatpush.msra.mxu2 %v551_v4 }
  0x7d   : > { %671 = vmatpush.msrb.mxu3 %v566_v22  ;;  %689 = vmatpush.msra.mxu0 %v584_v28 }
  0x7e   : > { %697 = vmatpush.msrb.mxu1 %v612_v0  ;;  %651 = vmatpush.msra.mxu2 %v550_v8 }
  0x7f   : > { %672 = vmatpush.msrb.mxu3 %v565_v25  ;;  %690 = vmatpush.msra.mxu0 %v583_v30 }
  0x80   : > { %698 = vmatpush.msrb.mxu1 %v611_v1  ;;  %652 = vmatpush.msra.mxu2 %v549_v12 }
  0x81   : > { %691 = vmatpush.msra.mxu0 %v582_v32 }
  0x82   : > { %699 = vmatpush.msrb.mxu1 %v610_v2 }
  0x83   : > { %692 = vmatpush.msra.mxu0 %v581_v34 }
  0x84   : > { %700 = vmatpush.msrb.mxu1 %v609_v3 }
  0x86   : > { %701 = vmatpush.msrb.mxu1 %v608_v7 }
  0x88   : > { %702 = vmatpush.msrb.mxu1 %v607_v11 }
  0x8a   : > { %703 = vmatpush.msrb.mxu1 %v606_v15 }
  0x8c   : > { %704 = vmatpush.msrb.mxu1 %v605_v18 }
  0x8e   : > { %705 = vmatpush.msrb.mxu1 %v604_v21 }
  0x90   : > { %706 = vmatpush.msrb.mxu1 %v603_v24 }
  0x92   : > { %707 = vmatpush.msrb.mxu1 %v602_v27 }
  0x94   : > { %708 = vmatpush.msrb.mxu1 %v601_v29 }
  0x96   : > { %709 = vmatpush.msrb.mxu1 %v600_v31 }
  0x98   : > { %710 = vmatpush.msrb.mxu1 %v599_v33 }
  0x9a   : > { %711 = vmatpush.msrb.mxu1 %v598_v35 }
  0x9c   : > { %712 = vmatpush.msrb.mxu1 %v597_v36 }
  0xd7   : > { %v445_v39 = vpop.f32.mrf.mxu0 }
  0xd8   : > { %v446_v41 = vadd.f32 %v445_v39, %v414_v38 }
  0xda   : > { %v528_v42 = vmax.f32 %v446_v41, 0.0 }
  0xdc   : > { %v465_v43 = vpop.f32.mrf.mxu2  ;;  %633 = vmatmul.f32.vlgmr.msra.gmra.mxu1 %v528_v42 }
  0xdd   : > { %v466_v44 = vadd.f32 %v465_v43, %v415_v40 }
  0xdf   : > { %v529_v47 = vmax.f32 %v466_v44, 0.0 }
  0xe0   : > { %v525_v50 = vpop.f32.mrf.mxu0 }
  0xe1   : > { %653 = vmatmul.f32.vlgmr.msra.gmra.mxu2 %v529_v47  ;;  %v505_v49 = vpop.f32.mrf.mxu3  ;;  %v526_v52 = vadd.f32 %v525_v50, %v418_v46 }
  0xe2   : > { %v506_v51 = vadd.f32 %v505_v49, %v417_v45 }
  0xe3   : > { %v532_v55 = vmax.f32 %v526_v52, 0.0 }
  0xe4   : > { %v485_v53 = vpop.f32.mrf.mxu2  ;;  %v531_v54 = vmax.f32 %v506_v51, 0.0 }
  0xe5   : > { %v486_v56 = vadd.f32 %v485_v53, %v416_v48  ;;  %713 = vmatmul.f32.vlgmr.msrb.gmra.mxu1 %v532_v55 }
  0xe6   : > { %693 = vmatmul.f32.vlgmr.msra.gmra.mxu0 %v531_v54 }
  0xe7   : > { %v530_v57 = vmax.f32 %v486_v56, 0.0 }
  0xe9   : > { %673 = vmatmul.f32.vlgmr.msrb.gmra.mxu3 %v530_v57 }
 0x159   : > { %v634_v59 = vpop.f32.mrf.mxu1 }
 0x15a   : > { %v635_v60 = vadd.f32 %v1030_v58, %v634_v59 }
 0x162   : > { %v714_v2 = vpop.f32.mrf.mxu1 }
 0x163   : > { %v694_v0 = vpop.f32.mrf.mxu0 }
 0x164   : > { %v654_v61 = vpop.f32.mrf.mxu2 }
 0x165   : > { %v655_v62 = vadd.f32 %v654_v61, %v635_v60 }
 0x16c   : > { %v674_v63 = vpop.f32.mrf.mxu3 }
 0x16d   : > { %v675_v1 = vadd.f32 %v674_v63, %v655_v62 }
 0x16f   : > { %v695_v3 = vadd.f32 %v694_v0, %v675_v1 }
 0x171   : > { %v715_v4 = vadd.f32 %v714_v2, %v695_v3 }
 0x173   : > { %v717_v5 = vmul.f32 1.442695, %v715_v4 }
 0x175   : > { %1031 = vpow2.f32 %v717_v5 }
 0x17b   : > { %v1032_v7 = vpop.eup %1031 }
 0x17c   : > { %v720_v8 = vadd.f32 %v1032_v7, %v719_v6  ;;  %722 = vst [vmem:[%s390_s14] sm:$0xff] %v1032_v7 }
 0x17d   : > { %1210 = shalt.err (!%p1207_p12)
}
 0x17e   : > { %956 = dma.vmem_to_hbm [thread:$0]  (%p1412_p0), %s756_s11, 128, %s758_s29, %s729_s12   ;;  %721 = vst [vmem:[%s383_s26] sm:$0xff] %v720_v8 }
 0x17f   : > { %s724_s20 = scalar_lea.sflag [#allocation4], %s1485_s10  ;;  %s1225_s30 = sshra.s32 %s1530_s8, 4  ;;  %s1226_s30 = int_to_ptr.hbm [resolvable:$true] %s1225_s30 }
 0x180   : > { %s1227_s1 = scalar_lea.hbm %s1226_s30, 8  ;;  %s1231_s13 = scalar_lea.hbm %s1582_s6, 16 }
 0x181   : > { %p1228_p2 = scmp.ne.s32.totalorder %s1226_s30, %s1227_s1  ;;  %p1232_p9 = scmp.lt.s32.totalorder %s1226_s30, %s1582_s6 }
 0x182   : > { %p1233_p4 = scmp.lt.s32.totalorder %s1231_s13, %s1227_s1 }
 0x183   : > { %p1229_p7 = pnand %p1228_p2, %p1412_p0 }
 0x184   : > { %p1234_p13 = por %p1233_p4, %p1232_p9 }
 0x185   : > { %p1230_p3 = pneg %p1229_p7 }
 0x187   : > { %p1235_p1 = pnand %p1234_p13, %p1230_p3 }
 0x189   : > { %1238 = shalt.err (!%p1235_p1)
}
 0x18a   : > { %955 = dma.vmem_to_hbm [thread:$0]  (%p1412_p0), %s742_s28, 128, %s1530_s8, %s724_s20  }
 0x18b PF: > { %s1609_s11 = sld [smem:[#allocation21_spill]]  ;;  %s769_s29 = sand.u32 1, %s1281_s24  }
 0x18c   : > { %s770_s26 = scalar_lea.sflag [#allocation4], %s769_s29 }
 0x191   : > { %p1610_p8 = scmp.ge.s32.totalorder %s1609_s11, 2 }
 0x193   : > { %p977_p10 = pnand %p1610_p8, %p1418_p5 }
 0x195   : > { %p978_p6 = pneg %p977_p10 }
 0x197   : > { %1272 = dma.done.wait (%p978_p6), %s770_s26, 128  }
 0x198   : > { %1274 = vsyncadd (%p978_p6), %s770_s26, 4294967168  ;;  %s780_s12 = scalar_lea.sflag [#allocation13], %s769_s29 }
 0x199   : > { %1276 = dma.done.wait (%p978_p6), %s780_s12, 128  }
 0x19a   : > { %1278 = vsyncadd (%p978_p6), %s780_s12, 4294967168  ;;  %s1611_s27 = sld [smem:[#allocation22_spill]]  ;;  %s1614_s24 = smov %s1285_s25 }
 0x19b   : > { %s1612_s22 = sld [smem:[#allocation20_spill]] }
 0x19c   : > { %s1613_s26 = sld [smem:[#allocation23_spill]] }
 0x1a0   : > { %p26_p0 = scmp.ge.s32.totalorder %s1611_s27, 4  }
 0x1a1   : > { %s1615_s25 = smov %s1612_s22 }
 0x1a2   :  { %28 = sbr.rel (!%p26_p0) target bundleno = 11 (0xb), region = 129 }
 0x1a7   :  { %786 = vsyncpa [#allocation3], 1 }
 0x1a8   :  { %788 = vsyncpa [#allocation3 + $0x1], 1 }
 0x1a9   :  { %789 = vsyncpa [#allocation6], 1 }
 0x1aa   :  { %790 = vsyncpa [#allocation9], 1 }
 0x1ab   :  { %791 = vsyncpa [#allocation4], 1 }
 0x1ac   :  { %793 = vsyncpa [#allocation4 + $0x1], 1 }
 0x1ad   :  { %794 = vsyncpa [#allocation13], 1 }
 0x1ae   :  { %796 = vsyncpa [#allocation13 + $0x1], 1 }

</bundles_post_ra>
